<compile_context>
chip_gen: v5e
topology: v5e:2x2
jax: 0.10.0
libtpu: 0.0.40
codegen_flags: <defaults>
</compile_context>

<pallas_src>
import functools

import jax
import jax.numpy as jnp
from jax.experimental import pallas as pl
from jax.experimental.pallas import tpu as pltpu


# ----------------------------------------------------------------------------- kernel
def _mlp_kernel(num_layers, *refs):
    """Fused MLP forward for one batch tile.

    refs = (x_ref, w0_ref, b0_ref, ..., w{L-1}_ref, b{L-1}_ref, o_ref)
      x_ref : (TILE_M, in_dim)    f32
      w_i   : (in_i, out_i)       f32  (pre-transposed in the wrapper)
      b_i   : (1, out_i)          f32
      o_ref : (TILE_M, final_dim) f32
    """
    x_ref = refs[0]
    o_ref = refs[-1]
    param_refs = refs[1:-1]

    h = x_ref[...]
    for idx in range(num_layers):
        w = param_refs[2 * idx][...]       # (in_i, out_i) -> plain h @ w on the MXU
        b = param_refs[2 * idx + 1][...]   # (1, out_i)
        h = jnp.dot(h, w, preferred_element_type=jnp.float32) + b
        if idx < num_layers - 1:
            h = jnp.maximum(h, 0.0)        # ReLU
    o_ref[...] = jax.nn.sigmoid(h).astype(o_ref.dtype)


# ----------------------------------------------------------------------------- tiling
_MAX_TILE_M = 4096          # largest batch tile per grid step (multiple of 8)
_MIN_GRID_STEPS = 2         # so v7x megacore can use both TensorCores
_MEGACORE_BATCH = 128       # below this, a single full-extent tile is fine
_XLA_FALLBACK_BATCH = 256   # below this, pallas_call dispatch overhead dominates


def _round_up(x, m):
    return -(-x // m) * m


def _pick_tile_m(batch):
    """Batch-tile size.  Either full-extent (small batch) or a multiple of 8."""
    if batch <= _MEGACORE_BATCH:
        return batch                                   # single full-extent tile
    n_steps = max(_MIN_GRID_STEPS, pl.cdiv(batch, _MAX_TILE_M))
    tile_m = _round_up(pl.cdiv(batch, n_steps), 8)
    return min(tile_m, _MAX_TILE_M)


def _estimate_vmem_bytes(tile_m, layer_sizes):
    """Rough VMEM footprint (f32): double-buffered x/out + resident params + live acts."""
    f32 = 4
    widest = max(layer_sizes)
    io = 2 * tile_m * layer_sizes[0] * f32 + 2 * tile_m * layer_sizes[-1] * f32
    params = sum(2 * (layer_sizes[i] * layer_sizes[i + 1] + layer_sizes[i + 1]) * f32
                 for i in range(len(layer_sizes) - 1))
    acts = 2 * tile_m * widest * f32
    return io + params + acts


# ----------------------------------------------------------------------------- wrapper
def simple_network_forward(x, weights, biases, *, force_pallas=False):
    """SimpleNetwork forward as a single fused Pallas TPU kernel.

    Args:
      x:       [batch, in_dim] float32.
      weights: list of PyTorch-layout weights, each (out_i, in_i).
      biases:  list of biases, each (out_i,).
      force_pallas: skip the small-batch XLA fallback (for testing the kernel).
    Returns:
      [batch, final_dim] float32 sigmoid output.
    """
    num_layers = len(weights)
    batch, in_dim = x.shape
    final_dim = weights[-1].shape[0]

    # Small-batch fallback: fused XLA matmul chain beats pallas_call fixed cost.
    if batch < _XLA_FALLBACK_BATCH and not force_pallas:
        return _reference_forward(x, weights, biases)

    tile_m = _pick_tile_m(batch)
    grid = (pl.cdiv(batch, tile_m),)   # ragged last block handled by Pallas masking

    # Activations: tiled over batch, double-buffered by BlockSpec.
    x_spec = pl.BlockSpec((tile_m, in_dim), lambda i: (i, 0))
    out_spec = pl.BlockSpec((tile_m, final_dim), lambda i: (i, 0))

    # Parameters: full-array blocks whose index_map ignores the grid index
    # -> loaded once, VMEM-resident across all batch tiles.
    args = [x]
    in_specs = [x_spec]
    layer_sizes = [in_dim]
    for w, b in zip(weights, biases):
        w_t = w.T                                   # (in_i, out_i): one-time, trace-level
        b2 = b.reshape(1, -1)                       # (1, out_i)
        args.append(w_t)
        args.append(b2)
        in_specs.append(pl.BlockSpec(w_t.shape, lambda i: (0, 0)))
        in_specs.append(pl.BlockSpec(b2.shape, lambda i: (0, 0)))
        layer_sizes.append(w.shape[0])

    out_shape = jax.ShapeDtypeStruct((batch, final_dim), jnp.float32)

    compiler_kwargs = dict(dimension_semantics=("parallel",))
    vmem_est = _estimate_vmem_bytes(tile_m, layer_sizes)
    if 2 * vmem_est > 16 * 1024 * 1024:             # above conservative v5e default
        compiler_kwargs["vmem_limit_bytes"] = min(2 * vmem_est + (1 << 20),
                                                  64 * 1024 * 1024)

    kernel = functools.partial(_mlp_kernel, num_layers)

    return pl.pallas_call(
        kernel,
        grid=grid,
        in_specs=in_specs,
        out_specs=out_spec,
        out_shape=out_shape,
        compiler_params=pltpu.CompilerParams(**compiler_kwargs),
    )(*args)


def _reference_forward(x, weights, biases):
    """Plain-JAX reference matching the PyTorch module semantics."""
    h = x
    for idx, (w, b) in enumerate(zip(weights, biases)):
        h = h @ w.T + b
        if idx < len(weights) - 1:
            h = jnp.maximum(h, 0.0)
    return jax.nn.sigmoid(h)


# ----------------------------------------------------------------------------- main
if __name__ == "__main__":
    # SimpleNetwork(in_dim=16, hidden_dims=(32, 32), final_dim=8)
    in_dim = 16
    hidden_dims = (32, 32)
    final_dim = 8

    layer_sizes = (in_dim,) + hidden_dims + (final_dim,)

    key = jax.random.PRNGKey(0)
    keys = jax.random.split(key, 2 + 2 * (len(layer_sizes) - 1))

    # Deterministic init mimicking nn.Linear default U(-1/sqrt(fan_in), 1/sqrt(fan_in))
    weights = []
    biases = []
    for i in range(len(layer_sizes) - 1):
        fan_in = layer_sizes[i]
        fan_out = layer_sizes[i + 1]
        bound = 1.0 / (fan_in ** 0.5)
        w = jax.random.uniform(keys[2 + 2 * i], (fan_out, fan_in),
                               minval=-bound, maxval=bound, dtype=jnp.float32)
        b = jax.random.uniform(keys[3 + 2 * i], (fan_out,),
                               minval=-bound, maxval=bound, dtype=jnp.float32)
        weights.append(w)
        biases.append(b)

    # 1) Spec-sized input (batch=2), forced through the Pallas kernel.
    x_small = jax.random.normal(keys[0], (2, in_dim), dtype=jnp.float32)
    out_small = jax.block_until_ready(
        simple_network_forward(x_small, weights, biases, force_pallas=True))
    ref_small = _reference_forward(x_small, weights, biases)
    assert out_small.shape == (2, final_dim)
    assert jnp.allclose(out_small, ref_small, atol=1e-5, rtol=1e-5), "small-batch mismatch"

    # 2) Larger, non-tile-divisible batch: exercises the 2-step "parallel" grid
    #    and the ragged (un-padded) edge-block path.
    x_big = jax.random.normal(keys[1], (520, in_dim), dtype=jnp.float32)
    out_big = jax.block_until_ready(simple_network_forward(x_big, weights, biases))
    ref_big = _reference_forward(x_big, weights, biases)
    assert out_big.shape == (520, final_dim)
    assert jnp.allclose(out_big, ref_big, atol=1e-5, rtol=1e-5), "large-batch mismatch"

    print("KERNEL_OK")
</pallas_src>

<mosaic_0001>
module attributes {stable_mosaic.version = 11 : i64} {
  func.func @_mlp_kernel(%arg0: i32, %arg1: memref<2x16xf32, #tpu.memory_space<vmem>>, %arg2: memref<16x32xf32, #tpu.memory_space<vmem>>, %arg3: memref<1x32xf32, #tpu.memory_space<vmem>>, %arg4: memref<32x32xf32, #tpu.memory_space<vmem>>, %arg5: memref<1x32xf32, #tpu.memory_space<vmem>>, %arg6: memref<32x8xf32, #tpu.memory_space<vmem>>, %arg7: memref<1x8xf32, #tpu.memory_space<vmem>>, %arg8: memref<2x8xf32, #tpu.memory_space<vmem>>) attributes {dimension_semantics = [#tpu.dimension_semantics<parallel>], iteration_bounds = array<i64: 1>, scalar_prefetch = 0 : i64, scratch_operands = 0 : i64, tpu.core_type = #tpu.core_type<tc>, window_params = [{transform_indices = @transform_0, window_bounds = array<i64: 2, 16>}, {pipeline_mode = #tpu.pipeline_mode<synchronous>, transform_indices = @transform_1, window_bounds = array<i64: 16, 32>}, {pipeline_mode = #tpu.pipeline_mode<synchronous>, transform_indices = @transform_2, window_bounds = array<i64: 1, 32>}, {pipeline_mode = #tpu.pipeline_mode<synchronous>, transform_indices = @transform_3, window_bounds = array<i64: 32, 32>}, {pipeline_mode = #tpu.pipeline_mode<synchronous>, transform_indices = @transform_4, window_bounds = array<i64: 1, 32>}, {pipeline_mode = #tpu.pipeline_mode<synchronous>, transform_indices = @transform_5, window_bounds = array<i64: 32, 8>}, {pipeline_mode = #tpu.pipeline_mode<synchronous>, transform_indices = @transform_6, window_bounds = array<i64: 1, 8>}, {transform_indices = @transform_7, window_bounds = array<i64: 2, 8>}]} {
    %c0 = arith.constant 0 : index
    %c0_0 = arith.constant 0 : index
    %0 = vector.load %arg1[%c0, %c0_0] : memref<2x16xf32, #tpu.memory_space<vmem>>, vector<2x16xf32>
    %c0_1 = arith.constant 0 : index
    %c0_2 = arith.constant 0 : index
    %1 = vector.load %arg2[%c0_1, %c0_2] : memref<16x32xf32, #tpu.memory_space<vmem>>, vector<16x32xf32>
    %c0_3 = arith.constant 0 : index
    %c0_4 = arith.constant 0 : index
    %2 = vector.load %arg3[%c0_3, %c0_4] : memref<1x32xf32, #tpu.memory_space<vmem>>, vector<1x32xf32>
    %cst = arith.constant dense<0.000000e+00> : vector<2x32xf32>
    %3 = tpu.matmul %0, %1, %cst {dimension_numbers = #tpu.dot_dimension_numbers<[1], [0], [0], [1], [0, 0, 1, 1], [], []>} : vector<2x16xf32>, vector<16x32xf32>, vector<2x32xf32> -> vector<2x32xf32>
    %4 = vector.broadcast %2 : vector<1x32xf32> to vector<2x32xf32>
    %5 = arith.addf %3, %4 : vector<2x32xf32>
    %cst_5 = arith.constant 0.000000e+00 : f32
    %6 = vector.broadcast %cst_5 : f32 to vector<2x32xf32>
    %7 = arith.maximumf %5, %6 : vector<2x32xf32>
    %c0_6 = arith.constant 0 : index
    %c0_7 = arith.constant 0 : index
    %8 = vector.load %arg4[%c0_6, %c0_7] : memref<32x32xf32, #tpu.memory_space<vmem>>, vector<32x32xf32>
    %c0_8 = arith.constant 0 : index
    %c0_9 = arith.constant 0 : index
    %9 = vector.load %arg5[%c0_8, %c0_9] : memref<1x32xf32, #tpu.memory_space<vmem>>, vector<1x32xf32>
    %cst_10 = arith.constant dense<0.000000e+00> : vector<2x32xf32>
    %10 = tpu.matmul %7, %8, %cst_10 {dimension_numbers = #tpu.dot_dimension_numbers<[1], [0], [0], [1], [0, 0, 1, 1], [], []>} : vector<2x32xf32>, vector<32x32xf32>, vector<2x32xf32> -> vector<2x32xf32>
    %11 = vector.broadcast %9 : vector<1x32xf32> to vector<2x32xf32>
    %12 = arith.addf %10, %11 : vector<2x32xf32>
    %cst_11 = arith.constant 0.000000e+00 : f32
    %13 = vector.broadcast %cst_11 : f32 to vector<2x32xf32>
    %14 = arith.maximumf %12, %13 : vector<2x32xf32>
    %c0_12 = arith.constant 0 : index
    %c0_13 = arith.constant 0 : index
    %15 = vector.load %arg6[%c0_12, %c0_13] : memref<32x8xf32, #tpu.memory_space<vmem>>, vector<32x8xf32>
    %c0_14 = arith.constant 0 : index
    %c0_15 = arith.constant 0 : index
    %16 = vector.load %arg7[%c0_14, %c0_15] : memref<1x8xf32, #tpu.memory_space<vmem>>, vector<1x8xf32>
    %cst_16 = arith.constant dense<0.000000e+00> : vector<2x8xf32>
    %17 = tpu.matmul %14, %15, %cst_16 {dimension_numbers = #tpu.dot_dimension_numbers<[1], [0], [0], [1], [0, 0, 1, 1], [], []>} : vector<2x32xf32>, vector<32x8xf32>, vector<2x8xf32> -> vector<2x8xf32>
    %18 = vector.broadcast %16 : vector<1x8xf32> to vector<2x8xf32>
    %19 = arith.addf %17, %18 : vector<2x8xf32>
    %20 = arith.negf %19 : vector<2x8xf32>
    %21 = math.exp %20 : vector<2x8xf32>
    %cst_17 = arith.constant 1.000000e+00 : f32
    %22 = vector.broadcast %cst_17 : f32 to vector<2x8xf32>
    %23 = arith.addf %22, %21 : vector<2x8xf32>
    %24 = arith.divf %22, %23 : vector<2x8xf32>
    %c0_18 = arith.constant 0 : index
    %c0_19 = arith.constant 0 : index
    %25 = vector.load %arg8[%c0_18, %c0_19] : memref<2x8xf32, #tpu.memory_space<vmem>>, vector<2x8xf32>
    tpu.vector_store %arg8[%c0_18, %c0_19], %24 {strides = array<i32>} : memref<2x8xf32, #tpu.memory_space<vmem>>, vector<2x8xf32>,
    return
  }
  func.func @transform_0(%arg0: i32) -> (i32, i32) {
    %c0_i32 = arith.constant 0 : i32
    %c0_i32_0 = arith.constant 0 : i32
    return %arg0, %c0_i32 : i32, i32
  }
  func.func @transform_1(%arg0: i32) -> (i32, i32) {
    %c0_i32 = arith.constant 0 : i32
    %c0_i32_0 = arith.constant 0 : i32
    %c0_i32_1 = arith.constant 0 : i32
    return %c0_i32, %c0_i32_0 : i32, i32
  }
  func.func @transform_2(%arg0: i32) -> (i32, i32) {
    %c0_i32 = arith.constant 0 : i32
    %c0_i32_0 = arith.constant 0 : i32
    %c0_i32_1 = arith.constant 0 : i32
    return %c0_i32, %c0_i32_0 : i32, i32
  }
  func.func @transform_3(%arg0: i32) -> (i32, i32) {
    %c0_i32 = arith.constant 0 : i32
    %c0_i32_0 = arith.constant 0 : i32
    %c0_i32_1 = arith.constant 0 : i32
    return %c0_i32, %c0_i32_0 : i32, i32
  }
  func.func @transform_4(%arg0: i32) -> (i32, i32) {
    %c0_i32 = arith.constant 0 : i32
    %c0_i32_0 = arith.constant 0 : i32
    %c0_i32_1 = arith.constant 0 : i32
    return %c0_i32, %c0_i32_0 : i32, i32
  }
  func.func @transform_5(%arg0: i32) -> (i32, i32) {
    %c0_i32 = arith.constant 0 : i32
    %c0_i32_0 = arith.constant 0 : i32
    %c0_i32_1 = arith.constant 0 : i32
    return %c0_i32, %c0_i32_0 : i32, i32
  }
  func.func @transform_6(%arg0: i32) -> (i32, i32) {
    %c0_i32 = arith.constant 0 : i32
    %c0_i32_0 = arith.constant 0 : i32
    %c0_i32_1 = arith.constant 0 : i32
    return %c0_i32, %c0_i32_0 : i32, i32
  }
  func.func @transform_7(%arg0: i32) -> (i32, i32) {
    %c0_i32 = arith.constant 0 : i32
    %c0_i32_0 = arith.constant 0 : i32
    return %arg0, %c0_i32 : i32, i32
  }
}

</mosaic_0001>

<bundles_post_ra>
// kernel: tpu_custom_call.1
= control target key start
LH: loop header
LB: loop body
LE: loop exit
PB: predicated region body
PF: predicated region fallthrough
CT: control target
= control target key end

     0   :  { %12 = vsyncpa [#allocation3], 0  ;;  %s330_s0 = inlined_call_operand.vmem [shape: f32[2,16], index: 0, kind: input, shape index: {}]   ;;  %s331_s1 = inlined_call_operand.hbm [shape: f32[16,32], index: 1, kind: input, shape index: {}]   ;;  %s332_s2 = inlined_call_operand.vmem [shape: f32[1,32], index: 2, kind: input, shape index: {}]   ;;  %s333_s3 = inlined_call_operand.vmem [shape: f32[32,32], index: 3, kind: input, shape index: {}]   ;;  %s334_s4 = inlined_call_operand.vmem [shape: f32[1,32], index: 4, kind: input, shape index: {}]   ;;  %s335_s5 = inlined_call_operand.vmem [shape: f32[32,8], index: 5, kind: input, shape index: {}]   ;;  %s336_s6 = inlined_call_operand.vmem [shape: f32[1,8], index: 6, kind: input, shape index: {}]   ;;  %s337_s7 = inlined_call_operand.hbm [shape: f32[2,8], index: 7, kind: output, shape index: {}]  }
   0x1   :  { %13 = vsyncpa [#allocation4], 0  ;;  %s20_s26 = sshll.u32 %s331_s1, 4  ;;  %s244_s27 = smov [#allocation2]   ;;  %s21_s26 = int_to_ptr.hbm [resolvable:$true] %s20_s26 }
   0x2   :  { %s22_s28 = sshll.u32 %s244_s27, 4  ;;  %s245_s29 = smov 128   ;;  %s23_s28 = int_to_ptr.vmem [resolvable:$true] %s22_s28 }
   0x3   :  { %s246_s30 = smov 8  }
   0x4   :  { %28 = dma.hbm_to_vmem [thread:$0]  %s21_s26, 256, %s23_s28, [#allocation3], %s245_s29, %s245_s29, %s246_s30  }
   0x5   :  { %240 = dma.done.wait [#allocation3], 256  }
   0x6   :  { %241 = vsyncadd [#allocation3], 4294967040  ;;  %v45_v0 = vld [vmem:[#allocation2 + $0x8] sm:$0xff]  ;;  %v44_v1 = vld [vmem:[#allocation2] sm:$0xff]  ;;  %vm50_vm0 = vcmask 130048   ;;  %vm83_vm1 = vcmask 261120  }
   0x7   :  { %68 = vmatpush.msra.mxu0 %v45_v0  ;;  %v43_v2 = vld [vmem:[%s330_s0] sm:$0x3]  ;;  %v78_v3 = vld [vmem:[%s333_s3 + $0x18] sm:$0xff]  ;;  %v77_v4 = vld [vmem:[%s333_s3 + $0x10] sm:$0xff]  ;;  %vm158_vm5 = vcmask 58368  }
   0x8   :  { %99 = vmatpush.msra.mxu1 %v78_v3  ;;  %v76_v5 = vld [vmem:[%s333_s3 + $0x8] sm:$0xff]  ;;  %v75_v6 = vld [vmem:[%s333_s3] sm:$0xff]  ;;  %v111_v7 = vld [vmem:[%s335_s5 + $0x18] sm:$0xff] }
   0x9   :  { %69 = vmatpush.msra.mxu0 %v44_v1  ;;  %131 = vmatpush.msra.mxu2 %v111_v7  ;;  %v185_v8 = vld [vmem:[%s332_s2] ss:$0 sm:$0xff]  ;;  %v110_v12 = vld [vmem:[%s335_s5 + $0x10] sm:$0xff]  ;;  %v109_v13 = vld [vmem:[%s335_s5 + $0x8] sm:$0xff] }
   0xa   :  { %177 = vmatmul.msk.f32.vlgmr.msra.gmra.mxu0 %vm50_vm0, %v43_v2  ;;  %100 = vmatpush.msra.mxu1 %v77_v4  ;;  %v108_v14 = vld [vmem:[%s335_s5] sm:$0xff] }
   0xb   :  { %132 = vmatpush.msra.mxu2 %v110_v12  ;;  %v186_v15 = vld [vmem:[%s334_s4] ss:$0 sm:$0xff]  ;;  %s247_s4 = smov [#allocation5]  }
   0xc   :  { %101 = vmatpush.msra.mxu1 %v76_v5  ;;  %v187_v19 = vld [vmem:[%s336_s6] ss:$0 sm:$0xff]  ;;  %s165_s5 = sshll.u32 %s247_s4, 4  ;;  %s167_s6 = sshll.u32 %s337_s7, 4  ;;  %s166_s5 = int_to_ptr.vmem [resolvable:$true] %s165_s5  ;;  %s168_s6 = int_to_ptr.hbm [resolvable:$true] %s167_s6 }
   0xd   :  { %133 = vmatpush.msra.mxu2 %v109_v13 }
   0xe   :  { %102 = vmatpush.msra.mxu1 %v75_v6 }
   0xf   :  { %134 = vmatpush.msra.mxu2 %v108_v14 }
  0x87   :  { %v71_v9 = vpop.f32.mrf.mxu0 }
  0x88   :  { %v72_v10 = vadd.f32 %v185_v8, %v71_v9 }
  0x8a   :  { %v74_v11 = vmax.f32 %v72_v10, 0.0 }
  0x8c   :  { %178 = vmatmul.msk.f32.vlgmr.msra.gmra.mxu1 %vm83_vm1, %v74_v11 }
 0x109   :  { %v104_v16 = vpop.f32.mrf.mxu1 }
 0x10a   :  { %v105_v17 = vadd.f32 %v186_v15, %v104_v16 }
 0x10c   :  { %v107_v18 = vmax.f32 %v105_v17, 0.0 }
 0x10e   :  { %179 = vmatmul.msk.f32.vlgmr.msra.gmra.mxu2 %vm83_vm1, %v107_v18 }
 0x191   :  { %v136_v20 = vpop.f32.mrf.mxu2 }
 0x192   :  { %v137_v21 = vadd.f32 %v187_v19, %v136_v20 }
 0x194   :  { %v180_v22 = vmul.f32 -1.442695, %v137_v21 }
 0x196   :  { %188 = vpow2.f32 %v180_v22 }
 0x19c   :  { %v189_v23 = vpop.eup %188 }
 0x19d   :  { %v142_v24 = vadd.f32 1.0, %v189_v23 }
 0x19f   :  { %190 = vrcp.f32 %v142_v24  ;;  %v154_v28 = vand.u32 2147483648, %v142_v24  ;;  %v152_v30 = vand.u32 2147483647, %v142_v24  ;;  %vm148_vm3 = vweird.f32 %v142_v24 }
 0x1a1   :  { %v155_v32 = vor.u32 1.1754944e-38, %v154_v28  ;;  %vm153_vm6 = vcmp.eq.f32.partialorder %v152_v30, 8.507059e+37 }
 0x1a5   :  { %v191_v25 = vpop.eup %190 }
 0x1a6   :  { %v144_v26 = vmul.f32 %v191_v25, %v142_v24  ;;  %vm149_vm2 = vweird.f32 %v191_v25 }
 0x1a7   :  { %vm150_vm4 = vmor %vm148_vm3, %vm149_vm2 }
 0x1a8   :  { %v145_v27 = vsub.f32 1.0, %v144_v26 }
 0x1aa   :  { %v146_v29 = vmul.f32 %v191_v25, %v145_v27 }
 0x1ac   :  { %v147_v31 = vadd.f32 %v191_v25, %v146_v29 }
 0x1ae   :  { %v151_v33 = vsel %vm150_vm4, %v191_v25, %v147_v31 }
 0x1af   :  { %v156_v34 = vsel %vm153_vm6, %v155_v32, %v151_v33 }
 0x1b0   :  { %159 = vst.msk [vmem:[#allocation5] sm:$0x3] %vm158_vm5, %v156_v34 }
 0x1b1   :  { %170 = dma.vmem_to_hbm [thread:$0]  %s166_s5, 32, %s168_s6, [#allocation4]  }
 0x1b2   :  { %242 = dma.done.wait [#allocation4], 32  }
 0x1b3   :  { %243 = vsyncadd [#allocation4], 4294967264 }
 0x1b4   :  { %175 = vsyncpa [#allocation3], 1 }
 0x1b5   :  { %176 = vsyncpa [#allocation4], 1 }

</bundles_post_ra>
